<compile_context>
chip_gen: v6e
topology: v6e:2x2x1
jax: 0.10.0
libtpu: 0.0.40
codegen_flags: <defaults>
</compile_context>

<pallas_src>
import functools

import jax
import jax.numpy as jnp
from jax.experimental import pallas as pl
from jax.experimental.pallas import tpu as pltpu


def _round_up(n: int, m: int) -> int:
    return ((n + m - 1) // m) * m


def linear_kernel(x_ref, w_ref, b_ref, o_ref):
    # MXU matmul with f32 accumulation + broadcast bias add, all in VMEM.
    acc = jnp.dot(x_ref[...], w_ref[...], preferred_element_type=jnp.float32)
    o_ref[...] = (acc + b_ref[...].astype(jnp.float32)).astype(o_ref.dtype)


@functools.partial(jax.jit, static_argnames=("block_b",))
def logistic_regression_forward(x, weight_t, bias, *, block_b: int = 8192):
    """z = x @ weight_t + bias.

    x:        [B, F]  (batch, features)
    weight_t: [F, C]  (transpose of PyTorch's nn.Linear weight [C, F])
    bias:     [C]
    returns:  [B, C]
    """
    B, F = x.shape
    F2, C = weight_t.shape
    assert F == F2, "feature dims must match"
    assert block_b % 8 == 0, "batch tile must be a multiple of 8 sublanes"

    out_dtype = x.dtype
    out_isize = jnp.dtype(out_dtype).itemsize
    bias2 = bias.reshape(1, C)

    # ---- batch tile selection (no padding: partial last block via cdiv) ----
    TB = min(block_b, _round_up(B, 8))
    # Keep at least 2 grid steps when there is enough work, so v7x's two
    # TensorCores both participate on the "parallel" axis.
    if B >= 16:
        TB = min(TB, _round_up(pl.cdiv(B, 2), 8))
    # Conservative VMEM cap for the double-buffered x + out tiles; fits every
    # generation's scoped default so no vmem_limit_bytes override is needed.
    bytes_per_row = 2 * (F * x.dtype.itemsize + C * out_isize)
    resident_bytes = 2 * (F * C + C) * jnp.dtype(weight_t.dtype).itemsize
    vmem_budget = 12 * 1024 * 1024
    max_tb = max(8, ((vmem_budget - resident_bytes) // bytes_per_row) // 8 * 8)
    TB = max(8, min(TB, max_tb))

    grid = (pl.cdiv(B, TB),)

    cost = pl.CostEstimate(
        flops=2 * B * F * C,
        transcendentals=0,
        bytes_accessed=(B * F * x.dtype.itemsize
                        + (F * C + C) * jnp.dtype(weight_t.dtype).itemsize
                        + B * C * out_isize),
    )

    return pl.pallas_call(
        linear_kernel,
        out_shape=jax.ShapeDtypeStruct((B, C), out_dtype),
        grid_spec=pltpu.PrefetchScalarGridSpec(
            num_scalar_prefetch=0,
            grid=grid,
            in_specs=[
                # x: stream batch tiles through VMEM (double-buffered DMA).
                pl.BlockSpec((TB, F), lambda i: (i, 0)),
                # weight / bias: same block every step -> stay VMEM-resident.
                pl.BlockSpec((F, C), lambda i: (0, 0)),
                pl.BlockSpec((1, C), lambda i: (0, 0)),
            ],
            # True-width output: HBM writeback is exactly B*C elements.
            out_specs=pl.BlockSpec((TB, C), lambda i: (i, 0)),
        ),
        compiler_params=pltpu.CompilerParams(
            dimension_semantics=("parallel",),
        ),
        cost_estimate=cost,
    )(x, weight_t, bias2)


def xavier_uniform(key, fan_out, fan_in, dtype=jnp.float32):
    # Matches torch.nn.init.xavier_uniform_ (gain=1.0) on a [fan_out, fan_in] weight.
    limit = jnp.sqrt(6.0 / (fan_in + fan_out))
    return jax.random.uniform(key, (fan_out, fan_in), dtype=dtype,
                              minval=-limit, maxval=limit)


if __name__ == "__main__":
    num_features = 32
    num_classes = 16
    batch = 8

    key = jax.random.PRNGKey(0)
    kx, kw, kb, kx2 = jax.random.split(key, 4)

    x = jax.random.normal(kx, (batch, num_features), dtype=jnp.float32)

    # Parameters (deterministic, mirrors nn.Linear + xavier_uniform_ on weight).
    weight = xavier_uniform(kw, num_classes, num_features)          # [C, F]
    bound = 1.0 / jnp.sqrt(num_features)                            # PyTorch Linear bias init
    bias = jax.random.uniform(kb, (num_classes,), dtype=jnp.float32,
                              minval=-bound, maxval=bound)

    z = logistic_regression_forward(x, weight.T, bias)
    jax.block_until_ready(z)

    z_ref = x @ weight.T + bias
    assert z.shape == (batch, num_classes)
    assert jnp.allclose(z, z_ref, atol=1e-5), "mismatch vs reference"

    # Second check: multi-step grid with a partial last block (exercises the
    # masked writeback path for B not divisible by the tile).
    x2 = jax.random.normal(kx2, (200, num_features), dtype=jnp.float32)
    z2 = logistic_regression_forward(x2, weight.T, bias)
    jax.block_until_ready(z2)
    z2_ref = x2 @ weight.T + bias
    assert z2.shape == (200, num_classes)
    assert jnp.allclose(z2, z2_ref, atol=1e-5), "mismatch vs reference (partial block)"

    print("KERNEL_OK")
</pallas_src>

<mosaic_0001>
module attributes {stable_mosaic.version = 11 : i64} {
  func.func @linear_kernel(%arg0: i32, %arg1: memref<8x32xf32, #tpu.memory_space<vmem>>, %arg2: memref<32x16xf32, #tpu.memory_space<vmem>>, %arg3: memref<1x16xf32, #tpu.memory_space<vmem>>, %arg4: memref<8x16xf32, #tpu.memory_space<vmem>>) attributes {dimension_semantics = [#tpu.dimension_semantics<parallel>], iteration_bounds = array<i64: 1>, scalar_prefetch = 0 : i64, scratch_operands = 0 : i64, tpu.core_type = #tpu.core_type<tc>, window_params = [{transform_indices = @transform_0, window_bounds = array<i64: 8, 32>}, {pipeline_mode = #tpu.pipeline_mode<synchronous>, transform_indices = @transform_1, window_bounds = array<i64: 32, 16>}, {pipeline_mode = #tpu.pipeline_mode<synchronous>, transform_indices = @transform_2, window_bounds = array<i64: 1, 16>}, {transform_indices = @transform_3, window_bounds = array<i64: 8, 16>}]} {
    %c0 = arith.constant 0 : index
    %c0_0 = arith.constant 0 : index
    %0 = vector.load %arg1[%c0, %c0_0] : memref<8x32xf32, #tpu.memory_space<vmem>>, vector<8x32xf32>
    %c0_1 = arith.constant 0 : index
    %c0_2 = arith.constant 0 : index
    %1 = vector.load %arg2[%c0_1, %c0_2] : memref<32x16xf32, #tpu.memory_space<vmem>>, vector<32x16xf32>
    %cst = arith.constant dense<0.000000e+00> : vector<8x16xf32>
    %2 = tpu.matmul %0, %1, %cst {dimension_numbers = #tpu.dot_dimension_numbers<[1], [0], [0], [1], [0, 0, 1, 1], [], []>} : vector<8x32xf32>, vector<32x16xf32>, vector<8x16xf32> -> vector<8x16xf32>
    %c0_3 = arith.constant 0 : index
    %c0_4 = arith.constant 0 : index
    %3 = vector.load %arg3[%c0_3, %c0_4] : memref<1x16xf32, #tpu.memory_space<vmem>>, vector<1x16xf32>
    %4 = vector.broadcast %3 : vector<1x16xf32> to vector<8x16xf32>
    %5 = arith.addf %2, %4 : vector<8x16xf32>
    %c0_5 = arith.constant 0 : index
    %c0_6 = arith.constant 0 : index
    %6 = vector.load %arg4[%c0_5, %c0_6] : memref<8x16xf32, #tpu.memory_space<vmem>>, vector<8x16xf32>
    tpu.vector_store %arg4[%c0_5, %c0_6], %5 {strides = array<i32>} : memref<8x16xf32, #tpu.memory_space<vmem>>, vector<8x16xf32>,
    return
  }
  func.func @transform_0(%arg0: i32) -> (i32, i32) {
    %c0_i32 = arith.constant 0 : i32
    %c0_i32_0 = arith.constant 0 : i32
    return %arg0, %c0_i32 : i32, i32
  }
  func.func @transform_1(%arg0: i32) -> (i32, i32) {
    %c0_i32 = arith.constant 0 : i32
    %c0_i32_0 = arith.constant 0 : i32
    %c0_i32_1 = arith.constant 0 : i32
    return %c0_i32, %c0_i32_0 : i32, i32
  }
  func.func @transform_2(%arg0: i32) -> (i32, i32) {
    %c0_i32 = arith.constant 0 : i32
    %c0_i32_0 = arith.constant 0 : i32
    %c0_i32_1 = arith.constant 0 : i32
    return %c0_i32, %c0_i32_0 : i32, i32
  }
  func.func @transform_3(%arg0: i32) -> (i32, i32) {
    %c0_i32 = arith.constant 0 : i32
    %c0_i32_0 = arith.constant 0 : i32
    return %arg0, %c0_i32 : i32, i32
  }
}

</mosaic_0001>

<bundles_post_ra>
// kernel: logistic_regression_forward.1
= control target key start
LH: loop header
LB: loop body
LE: loop exit
PB: predicated region body
PF: predicated region fallthrough
CT: control target
= control target key end

     0   :  { %v160_v1 = vmov 0.0   ;;  %vm161_vm0 = vmmov 0   ;;  %s204_s0 = inlined_call_operand.vmem [shape: f32[8,32], index: 0, kind: input, shape index: {}]   ;;  %s205_s1 = inlined_call_operand.vmem [shape: f32[32,16], index: 1, kind: input, shape index: {}]   ;;  %s206_s2 = inlined_call_operand.vmem [shape: f32[1,16], index: 2, kind: input, shape index: {}]   ;;  %s207_s3 = inlined_call_operand.hbm [shape: f32[8,16], index: 3, kind: output, shape index: {}]  }
   0x1   :  { %v19_v0 = vld [vmem:[%s205_s1 + $0x18] sm:$0xff]  ;;  %124 = vmatprep.subr.mxu0 %v160_v1  ;;  %v18_v2 = vld [vmem:[%s205_s1 + $0x10] sm:$0xff]  ;;  %132 = vmatprep.mubr.msk.f32.mxu0 %vm161_vm0, %v160_v1 }
   0x2   :  { %125 = vmatpush3.msra.mxu0 %v19_v0 }
   0x3   :  { %8 = vsyncpa [#allocation3], 0  ;;  %126 = vmatprep.subr.mxu0 %v160_v1  ;;  %v17_v3 = vld [vmem:[%s205_s1 + $0x8] sm:$0xff]  ;;  %v16_v4 = vld [vmem:[%s205_s1] sm:$0xff]  ;;  %vm27_vm1 = vcmask 261120   ;;  %s162_s24 = smov [#allocation2]  }
   0x4   :  { %127 = vmatpush3.msra.mxu0 %v18_v2  ;;  %v15_v5 = vld [vmem:[%s204_s0] sm:$0xff]  ;;  %s109_s25 = sshll.u32 %s162_s24, 4  ;;  %vm101_vm2 = vcmask 130048   ;;  %s110_s25 = int_to_ptr.vmem [resolvable:$true] %s109_s25 }
   0x5   :  { %128 = vmatprep.subr.mxu0 %v160_v1  ;;  %v117_v6 = vld [vmem:[%s206_s2] ss:$0 sm:$0xff]  ;;  %s138_s1 = scalar_lea.vmem %s110_s25, 128  ;;  %p143_p1 = scmp.lt.s32.totalorder %s110_s25, %s110_s25 }
   0x6   :  { %129 = vmatpush3.msra.mxu0 %v17_v3  ;;  %p139_p0 = scmp.ne.s32.totalorder %s110_s25, %s138_s1  ;;  %p144_p2 = scmp.lt.s32.totalorder %s138_s1, %s138_s1 }
   0x7   :  { %130 = vmatprep.subr.mxu0 %v160_v1 }
   0x8   :  { %131 = vmatpush3.msra.mxu0 %v16_v4  ;;  %p145_p3 = por %p144_p2, %p143_p1 }
   0x9   :  { %133 = vmatmul.mubr.msk.f32.vlgmr.msra.gmra.mxu0 %vm27_vm1, %v15_v5 }
   0xa   :  { %p146_p4 = pnand %p145_p3, %p139_p0 }
  0xc9   :  { %v97_v7 = vpop.f32.mrf.mxu0 }
  0xca   :  { %v98_v8 = vadd.f32 %v117_v6, %v97_v7 }
  0xcb   :  { %v134_v9 = vpop.f32.mrf.mxu0 }
  0xcc   :  { %102 = vst.msk [vmem:[#allocation2] sm:$0xff] %vm101_vm2, %v98_v8 }
  0xcd   :  { %149 = shalt.err (!%p146_p4)
}
  0xce   :  { %112 = dma.vmem_to_hbm [thread:$0]  %s110_s25, 128, %s207_s3, [#allocation3]  }
  0xcf   :  { %158 = dma.done.wait [#allocation3], 128  }
  0xd0   :  { %159 = vsyncadd [#allocation3], 4294967168 }
  0xd1   :  { %116 = vsyncpa [#allocation3], 1 }

</bundles_post_ra>
